<compile_context>
chip_gen: v5e
topology: v5e:2x2
jax: 0.10.0
libtpu: 0.0.40
codegen_flags: <defaults>
</compile_context>

<pallas_src>
import jax
import jax.numpy as jnp
from jax.experimental import pallas as pl
from jax.experimental.pallas import tpu as pltpu

K = 3  # MaxPool2d(kernel_size=3): stride=3, padding=0, floor mode


def _maxpool_kernel(x_ref, o_ref, hp_ref, os_ref):
    """Pool one block of fused-(N*C) image planes.

    x_ref : (TNC, H, W)    input tile  (VMEM)
    o_ref : (TNC, OH, OW)  output tile (VMEM)
    hp_ref: (TNC, OH, W)   scratch: H-pooled rows
    os_ref: (TNC, OH, OW)  scratch: assembled output block
    """
    OH = o_ref.shape[1]
    OW = o_ref.shape[2]
    Lh = (OH - 1) * K + 1  # last H-window start + 1
    Lw = (OW - 1) * K + 1  # last W-window start + 1

    # ---- stage 1: sliding-window max along H ------------------------------
    # Three full-width reads at row offsets 0/1/2 + two elementwise maxima (VPU).
    yh = jnp.maximum(
        jnp.maximum(x_ref[:, 0:Lh, :], x_ref[:, 1:Lh + 1, :]),
        x_ref[:, 2:Lh + 2, :])                        # (TNC, Lh, W)
    # Decimate rows by K (static, unrolled: O(OH) contiguous copies, not O(OH*OW)).
    for i in range(OH):
        hp_ref[:, i:i + 1, :] = yh[:, K * i:K * i + 1, :]

    # ---- stage 2: sliding-window max along W ------------------------------
    hp = hp_ref[...]                                  # (TNC, OH, W)
    yw = jnp.maximum(
        jnp.maximum(hp[:, :, 0:Lw], hp[:, :, 1:Lw + 1]),
        hp[:, :, 2:Lw + 2])                           # (TNC, OH, Lw)
    # Decimate columns by K into scratch ...
    for j in range(OW):
        os_ref[:, :, j:j + 1] = yw[:, :, K * j:K * j + 1]
    # ... then one lane-dense store of the whole output block.
    o_ref[...] = os_ref[...]


def _pick_block_nc(nc, h, w, itemsize, target_bytes=2 * 1024 * 1024):
    """Largest divisor of `nc` whose input block stays under `target_bytes`, then
    stepped down (if possible) so the grid has >=2 steps for megacore sharding."""
    divisors = [d for d in range(1, nc + 1) if nc % d == 0]
    block = 1
    for d in divisors:
        if d * h * w * itemsize <= target_bytes:
            block = d
    while block > 1 and nc // block < 2:
        block = max(d for d in divisors if d < block)
    return block


def maxpool2d_k3(x_nchw):
    """MaxPool2d(kernel_size=3, stride=3, padding=0, ceil_mode=False) on NCHW input."""
    N, C, H, W = x_nchw.shape
    OH = (H - K) // K + 1
    OW = (W - K) // K + 1
    NC = N * C

    # Free reshape (merges leading dims only -- no data movement, unlike the
    # NCHW<->NHWC transposes this replaces).
    x_flat = x_nchw.reshape(NC, H, W)

    tnc = _pick_block_nc(NC, H, W, x_nchw.dtype.itemsize)
    grid = (NC // tnc,)
    # TODO(synk): for large H*W (e.g. 224x224 planes) add an H-tile grid axis in
    # multiples of K so blocks stay within v7x's 64 MiB VMEM while remaining >=1 MiB.

    out_flat = pl.pallas_call(
        _maxpool_kernel,
        out_shape=jax.ShapeDtypeStruct((NC, OH, OW), x_nchw.dtype),
        grid_spec=pltpu.PrefetchScalarGridSpec(
            num_scalar_prefetch=0,
            grid=grid,
            in_specs=[
                # last two block dims equal the full (H, W) array extents
                pl.BlockSpec((tnc, H, W), lambda i: (i, 0, 0)),
            ],
            out_specs=pl.BlockSpec((tnc, OH, OW), lambda i: (i, 0, 0)),
            scratch_shapes=[
                pltpu.VMEM((tnc, OH, W), x_nchw.dtype),    # H-pooled rows
                pltpu.VMEM((tnc, OH, OW), x_nchw.dtype),   # assembled output block
            ],
        ),
        compiler_params=pltpu.CompilerParams(
            dimension_semantics=("parallel",),   # no reduction axis; megacore-friendly
            vmem_limit_bytes=32 * 1024 * 1024,   # raised vs v5e default; safe on v7x's 64 MiB
        ),
    )(x_flat)

    # Free reshape back to the NCHW output layout.
    return out_flat.reshape(N, C, OH, OW)


def _reference_maxpool(x_nchw):
    """Plain-JAX reference (floor mode: crop then block-reduce)."""
    N, C, H, W = x_nchw.shape
    OH = (H - K) // K + 1
    OW = (W - K) // K + 1
    xc = x_nchw[:, :, :OH * K, :OW * K]
    return jnp.max(xc.reshape(N, C, OH, K, OW, K), axis=(3, 5))


if __name__ == "__main__":
    key = jax.random.PRNGKey(0)
    # Small shapes consistent with the module: batch=2, channels=4, spatial=16
    x = jax.random.normal(key, (2, 4, 16, 16), dtype=jnp.float32)

    out = maxpool2d_k3(x)
    out = jax.block_until_ready(out)

    ref = _reference_maxpool(x)
    assert out.shape == (2, 4, 5, 5), out.shape
    assert out.dtype == x.dtype
    assert jnp.allclose(out, ref), "Pallas maxpool mismatch vs reference"

    print("KERNEL_OK")
</pallas_src>

<mosaic_0001>
module attributes {stable_mosaic.version = 11 : i64} {
  func.func @_maxpool_kernel(%arg0: i32, %arg1: memref<4x16x16xf32, #tpu.memory_space<vmem>>, %arg2: memref<4x5x5xf32, #tpu.memory_space<vmem>>, %arg3: memref<4x5x16xf32, #tpu.memory_space<vmem>>, %arg4: memref<4x5x5xf32, #tpu.memory_space<vmem>>) attributes {dimension_semantics = [#tpu.dimension_semantics<parallel>], iteration_bounds = array<i64: 2>, scalar_prefetch = 0 : i64, scratch_operands = 2 : i64, tpu.core_type = #tpu.core_type<tc>, window_params = [{transform_indices = @transform_0, window_bounds = array<i64: 4, 16, 16>}, {transform_indices = @transform_1, window_bounds = array<i64: 4, 5, 5>}]} {
    %c0 = arith.constant 0 : index
    %c0_0 = arith.constant 0 : index
    %c0_1 = arith.constant 0 : index
    %0 = vector.load %arg1[%c0, %c0_0, %c0_1] : memref<4x16x16xf32, #tpu.memory_space<vmem>>, vector<4x13x16xf32>
    %c0_2 = arith.constant 0 : index
    %c1 = arith.constant 1 : index
    %c0_3 = arith.constant 0 : index
    %1 = vector.load %arg1[%c0_2, %c1, %c0_3] : memref<4x16x16xf32, #tpu.memory_space<vmem>>, vector<4x13x16xf32>
    %2 = arith.maximumf %0, %1 : vector<4x13x16xf32>
    %c0_4 = arith.constant 0 : index
    %c2 = arith.constant 2 : index
    %c0_5 = arith.constant 0 : index
    %3 = vector.load %arg1[%c0_4, %c2, %c0_5] : memref<4x16x16xf32, #tpu.memory_space<vmem>>, vector<4x13x16xf32>
    %4 = arith.maximumf %2, %3 : vector<4x13x16xf32>
    %5 = vector.extract_strided_slice %4 {offsets = [0, 0, 0], sizes = [4, 1, 16], strides = [1, 1, 1]} : vector<4x13x16xf32> to vector<4x1x16xf32>
    %c0_6 = arith.constant 0 : index
    %c0_7 = arith.constant 0 : index
    %c0_8 = arith.constant 0 : index
    %6 = vector.load %arg3[%c0_6, %c0_7, %c0_8] : memref<4x5x16xf32, #tpu.memory_space<vmem>>, vector<4x1x16xf32>
    tpu.vector_store %arg3[%c0_6, %c0_7, %c0_8], %5 {strides = array<i32>} : memref<4x5x16xf32, #tpu.memory_space<vmem>>, vector<4x1x16xf32>,
    %7 = vector.extract_strided_slice %4 {offsets = [0, 3, 0], sizes = [4, 1, 16], strides = [1, 1, 1]} : vector<4x13x16xf32> to vector<4x1x16xf32>
    %c0_9 = arith.constant 0 : index
    %c1_10 = arith.constant 1 : index
    %c0_11 = arith.constant 0 : index
    %8 = vector.load %arg3[%c0_9, %c1_10, %c0_11] : memref<4x5x16xf32, #tpu.memory_space<vmem>>, vector<4x1x16xf32>
    tpu.vector_store %arg3[%c0_9, %c1_10, %c0_11], %7 {strides = array<i32>} : memref<4x5x16xf32, #tpu.memory_space<vmem>>, vector<4x1x16xf32>,
    %9 = vector.extract_strided_slice %4 {offsets = [0, 6, 0], sizes = [4, 1, 16], strides = [1, 1, 1]} : vector<4x13x16xf32> to vector<4x1x16xf32>
    %c0_12 = arith.constant 0 : index
    %c2_13 = arith.constant 2 : index
    %c0_14 = arith.constant 0 : index
    %10 = vector.load %arg3[%c0_12, %c2_13, %c0_14] : memref<4x5x16xf32, #tpu.memory_space<vmem>>, vector<4x1x16xf32>
    tpu.vector_store %arg3[%c0_12, %c2_13, %c0_14], %9 {strides = array<i32>} : memref<4x5x16xf32, #tpu.memory_space<vmem>>, vector<4x1x16xf32>,
    %11 = vector.extract_strided_slice %4 {offsets = [0, 9, 0], sizes = [4, 1, 16], strides = [1, 1, 1]} : vector<4x13x16xf32> to vector<4x1x16xf32>
    %c0_15 = arith.constant 0 : index
    %c3 = arith.constant 3 : index
    %c0_16 = arith.constant 0 : index
    %12 = vector.load %arg3[%c0_15, %c3, %c0_16] : memref<4x5x16xf32, #tpu.memory_space<vmem>>, vector<4x1x16xf32>
    tpu.vector_store %arg3[%c0_15, %c3, %c0_16], %11 {strides = array<i32>} : memref<4x5x16xf32, #tpu.memory_space<vmem>>, vector<4x1x16xf32>,
    %13 = vector.extract_strided_slice %4 {offsets = [0, 12, 0], sizes = [4, 1, 16], strides = [1, 1, 1]} : vector<4x13x16xf32> to vector<4x1x16xf32>
    %c0_17 = arith.constant 0 : index
    %c4 = arith.constant 4 : index
    %c0_18 = arith.constant 0 : index
    %14 = vector.load %arg3[%c0_17, %c4, %c0_18] : memref<4x5x16xf32, #tpu.memory_space<vmem>>, vector<4x1x16xf32>
    tpu.vector_store %arg3[%c0_17, %c4, %c0_18], %13 {strides = array<i32>} : memref<4x5x16xf32, #tpu.memory_space<vmem>>, vector<4x1x16xf32>,
    %c0_19 = arith.constant 0 : index
    %c0_20 = arith.constant 0 : index
    %c0_21 = arith.constant 0 : index
    %15 = vector.load %arg3[%c0_19, %c0_20, %c0_21] : memref<4x5x16xf32, #tpu.memory_space<vmem>>, vector<4x5x16xf32>
    %16 = vector.extract_strided_slice %15 {offsets = [0, 0, 0], sizes = [4, 5, 13], strides = [1, 1, 1]} : vector<4x5x16xf32> to vector<4x5x13xf32>
    %17 = vector.extract_strided_slice %15 {offsets = [0, 0, 1], sizes = [4, 5, 13], strides = [1, 1, 1]} : vector<4x5x16xf32> to vector<4x5x13xf32>
    %18 = arith.maximumf %16, %17 : vector<4x5x13xf32>
    %19 = vector.extract_strided_slice %15 {offsets = [0, 0, 2], sizes = [4, 5, 13], strides = [1, 1, 1]} : vector<4x5x16xf32> to vector<4x5x13xf32>
    %20 = arith.maximumf %18, %19 : vector<4x5x13xf32>
    %21 = vector.extract_strided_slice %20 {offsets = [0, 0, 0], sizes = [4, 5, 1], strides = [1, 1, 1]} : vector<4x5x13xf32> to vector<4x5x1xf32>
    %c0_22 = arith.constant 0 : index
    %c0_23 = arith.constant 0 : index
    %c0_24 = arith.constant 0 : index
    %22 = vector.load %arg4[%c0_22, %c0_23, %c0_24] : memref<4x5x5xf32, #tpu.memory_space<vmem>>, vector<4x5x1xf32>
    tpu.vector_store %arg4[%c0_22, %c0_23, %c0_24], %21 {strides = array<i32>} : memref<4x5x5xf32, #tpu.memory_space<vmem>>, vector<4x5x1xf32>,
    %23 = vector.extract_strided_slice %20 {offsets = [0, 0, 3], sizes = [4, 5, 1], strides = [1, 1, 1]} : vector<4x5x13xf32> to vector<4x5x1xf32>
    %c0_25 = arith.constant 0 : index
    %c0_26 = arith.constant 0 : index
    %c1_27 = arith.constant 1 : index
    %24 = vector.load %arg4[%c0_25, %c0_26, %c1_27] : memref<4x5x5xf32, #tpu.memory_space<vmem>>, vector<4x5x1xf32>
    tpu.vector_store %arg4[%c0_25, %c0_26, %c1_27], %23 {strides = array<i32>} : memref<4x5x5xf32, #tpu.memory_space<vmem>>, vector<4x5x1xf32>,
    %25 = vector.extract_strided_slice %20 {offsets = [0, 0, 6], sizes = [4, 5, 1], strides = [1, 1, 1]} : vector<4x5x13xf32> to vector<4x5x1xf32>
    %c0_28 = arith.constant 0 : index
    %c0_29 = arith.constant 0 : index
    %c2_30 = arith.constant 2 : index
    %26 = vector.load %arg4[%c0_28, %c0_29, %c2_30] : memref<4x5x5xf32, #tpu.memory_space<vmem>>, vector<4x5x1xf32>
    tpu.vector_store %arg4[%c0_28, %c0_29, %c2_30], %25 {strides = array<i32>} : memref<4x5x5xf32, #tpu.memory_space<vmem>>, vector<4x5x1xf32>,
    %27 = vector.extract_strided_slice %20 {offsets = [0, 0, 9], sizes = [4, 5, 1], strides = [1, 1, 1]} : vector<4x5x13xf32> to vector<4x5x1xf32>
    %c0_31 = arith.constant 0 : index
    %c0_32 = arith.constant 0 : index
    %c3_33 = arith.constant 3 : index
    %28 = vector.load %arg4[%c0_31, %c0_32, %c3_33] : memref<4x5x5xf32, #tpu.memory_space<vmem>>, vector<4x5x1xf32>
    tpu.vector_store %arg4[%c0_31, %c0_32, %c3_33], %27 {strides = array<i32>} : memref<4x5x5xf32, #tpu.memory_space<vmem>>, vector<4x5x1xf32>,
    %29 = vector.extract_strided_slice %20 {offsets = [0, 0, 12], sizes = [4, 5, 1], strides = [1, 1, 1]} : vector<4x5x13xf32> to vector<4x5x1xf32>
    %c0_34 = arith.constant 0 : index
    %c0_35 = arith.constant 0 : index
    %c4_36 = arith.constant 4 : index
    %30 = vector.load %arg4[%c0_34, %c0_35, %c4_36] : memref<4x5x5xf32, #tpu.memory_space<vmem>>, vector<4x5x1xf32>
    tpu.vector_store %arg4[%c0_34, %c0_35, %c4_36], %29 {strides = array<i32>} : memref<4x5x5xf32, #tpu.memory_space<vmem>>, vector<4x5x1xf32>,
    %c0_37 = arith.constant 0 : index
    %c0_38 = arith.constant 0 : index
    %c0_39 = arith.constant 0 : index
    %31 = vector.load %arg4[%c0_37, %c0_38, %c0_39] : memref<4x5x5xf32, #tpu.memory_space<vmem>>, vector<4x5x5xf32>
    %c0_40 = arith.constant 0 : index
    %c0_41 = arith.constant 0 : index
    %c0_42 = arith.constant 0 : index
    %32 = vector.load %arg2[%c0_40, %c0_41, %c0_42] : memref<4x5x5xf32, #tpu.memory_space<vmem>>, vector<4x5x5xf32>
    tpu.vector_store %arg2[%c0_40, %c0_41, %c0_42], %31 {strides = array<i32>} : memref<4x5x5xf32, #tpu.memory_space<vmem>>, vector<4x5x5xf32>,
    return
  }
  func.func @transform_0(%arg0: i32) -> (i32, i32, i32) {
    %c0_i32 = arith.constant 0 : i32
    %c0_i32_0 = arith.constant 0 : i32
    %c0_i32_1 = arith.constant 0 : i32
    return %arg0, %c0_i32, %c0_i32_0 : i32, i32, i32
  }
  func.func @transform_1(%arg0: i32) -> (i32, i32, i32) {
    %c0_i32 = arith.constant 0 : i32
    %c0_i32_0 = arith.constant 0 : i32
    %c0_i32_1 = arith.constant 0 : i32
    return %arg0, %c0_i32, %c0_i32_0 : i32, i32, i32
  }
}

</mosaic_0001>

<bundles_post_ra>
// kernel: tpu_custom_call.1
= control target key start
LH: loop header
LB: loop body
LE: loop exit
PB: predicated region body
PF: predicated region fallthrough
CT: control target
= control target key end

     0   :  { %6 = vsyncpa [#allocation5], 0  ;;  %s714_s0 = inlined_call_operand.hbm [shape: f32[8,16,16], index: 0, kind: input, shape index: {}]   ;;  %s715_s1 = inlined_call_operand.vmem [shape: f32[8,5,5], index: 1, kind: output, shape index: {}]  }
   0x1   :  { %8 = vsyncpa [#allocation5 + $0x1], 0  ;;  %s545_s6 = smov 0   ;;  %s547_s7 = smov 0  }
   0x2   :  { %s549_s8 = smov 0   ;;  %s551_s9 = smov 0  }
   0x3 LB: > { %s400_s10 = sadd.s32 4294967295, %s526_s9   ;;  %s565_s11 = sadd.s32 1, %s526_s9   ;;  %s526_s9 = sphi %s551_s9, %s722_s9   ;;  %s522_s8 = sphi %s549_s8, %s721_s8   ;;  %s518_s7 = sphi %s547_s7, %s720_s7   ;;  %s514_s6 = sphi %s545_s6, %s719_s6  }
   0x4   : > { %s18_s12 = ssub.s32 %s526_s9, %s565_s11  ;;  %s21_s13 = sadd.s32 1, %s522_s8 }
   0x5   : > { %p19_p0 = scmp.eq.s32.totalorder %s18_s12, 0  ;;  %p28_p1 = scmp.ne.s32.totalorder %s522_s8, %s518_s7 }
   0x6   : > { %p29_p2 = scmp.eq.s32.totalorder %s526_s9, 0  ;;  %p34_p3 = scmp.ne.s32.totalorder %s518_s7, %s514_s6 }
   0x7   : > { %s575_s14 = scalar_select %p19_p0, %s522_s8, %s21_s13  }
   0x8   : > { %p577_p4 = por %p29_p2, %p28_p1  ;;  %p35_p5 = scmp.eq.s32.totalorder %s400_s10, 0 }
   0x9   : > { %p422_p6 = scmp.lt.s32.totalorder %s526_s9, 2  ;;  %s84_s17 = sand.u32 1, %s522_s8  }
   0xa   : > { %p584_p7 = por %p35_p5, %p34_p3  ;;  %s404_s18 = sshll.u32 %s84_s17, 6 }
   0xb   : > { %s415_s19 = sshll.u32 %s526_s9, 6  ;;  %s88_s23 = scalar_lea.vmem [#allocation4], %s404_s18 }
   0xc   : > { %s94_s22 = scalar_lea.hbm %s714_s0, %s415_s19  ;;  %s97_s24 = sshll.u32 %s88_s23, 4  ;;  %s98_s24 = int_to_ptr.vmem [resolvable:$true] %s97_s24 }
   0xd   : > { %s95_s25 = sshll.u32 %s94_s22, 4  ;;  %p595_p8 = pnand %p422_p6, %p577_p4  ;;  %s96_s25 = int_to_ptr.hbm [resolvable:$true] %s95_s25 }
   0xe   : > { %p408_p9 = scmp.ge.s32.totalorder %s526_s9, 1  ;;  %s85_s27 = scalar_lea.sflag [#allocation5], %s84_s17 }
   0xf   : > { %s462_s28 = sshra.s32 %s96_s25, 4  ;;  %p466_p11 = pneg %p595_p8  ;;  %s463_s28 = int_to_ptr.hbm [resolvable:$true] %s462_s28 }
  0x10   : > { %s464_s29 = scalar_lea.hbm %s463_s28, 64  ;;  %s469_s3 = scalar_lea.hbm %s714_s0, 128 }
  0x11   : > { %p465_p10 = scmp.ne.s32.totalorder %s463_s28, %s464_s29  ;;  %p470_p0 = scmp.lt.s32.totalorder %s463_s28, %s714_s0 }
  0x12   : > { %p471_p1 = scmp.lt.s32.totalorder %s469_s3, %s464_s29 }
  0x13   : > { %p467_p12 = pnand %p466_p11, %p465_p10 }
  0x14   : > { %p472_p2 = por %p471_p1, %p470_p0 }
  0x15   : > { %p468_p13 = pneg %p467_p12 }
  0x17   : > { %p473_p3 = pnand %p472_p2, %p468_p13 }
  0x19   : > { %476 = shalt.err (!%p473_p3)
}
  0x1a   : > { %s528_s6 = smov 128   ;;  %s529_s12 = smov 8  }
  0x1b   : > { %421 = dma.hbm_to_vmem [thread:$0]  (!%p595_p8), %s96_s25, 1024, %s98_s24, %s85_s27, %s528_s6, %s528_s6, %s529_s12  }
  0x1c   : > { %p105_p4 = scmp.lt.s32.totalorder %s526_s9, 3 }
  0x1e   : > { %p106_p5 = pnand %p408_p9, %p105_p4 }
  0x1f   : > { %s111_s13 = sand.u32 (!%p106_p5), 1, %s518_s7  }
  0x20   : > { %109 = sbr.rel (%p106_p5) target bundleno = 346 (0x15a), region = 24  ;;  %s409_s15 = sshll.u32 (!%p106_p5), %s111_s13, 6 }
  0x21   : > { %s112_s17 = scalar_lea.sflag (!%p106_p5), [#allocation5], %s111_s13  ;;  %s614_s18 = scalar_lea.vmem (!%p106_p5), [#allocation4], %s409_s15 }
  0x25   : > { %509 = dma.done.wait (%p584_p7), %s112_s17, 1024  }
  0x26   : > { %511 = vsyncadd (%p584_p7), %s112_s17, 4294966272  ;;  %v146_v0 = vld [vmem:[%s614_s18 + $0x20] sm:$0xff]  ;;  %v147_v1 = vld [vmem:[%s614_s18 + $0x28] sm:$0x1f]  ;;  %vm182_vm0 = vcmask 122880   ;;  %vm187_vm1 = vcmask 125955  }
  0x27   : > { %v154_v2 = vld [vmem:[%s614_s18 + $0x21] sm:$0xff]  ;;  %v155_v3 = vld [vmem:[%s614_s18 + $0x29] sm:$0x1f]  ;;  %vm192_vm2 = vcmask 129030   ;;  %v144_v16 = vld [vmem:[%s614_s18 + $0x10] sm:$0xff]  ;;  %vm197_vm3 = vcmask 123905  }
  0x28   : > { %v162_v4 = vmax.f32 %v146_v0, %v154_v2  ;;  %v170_v5 = vld [vmem:[%s614_s18 + $0x22] sm:$0xff]  ;;  %v171_v6 = vld [vmem:[%s614_s18 + $0x2a] sm:$0x1f]  ;;  %v163_v7 = vmax.f32 %v147_v1, %v155_v3  ;;  %v152_v17 = vld [vmem:[%s614_s18 + $0x11] sm:$0xff]  ;;  %vm202_vm4 = vcmask 126980   ;;  %s530_s16 = smov 127  }
  0x29   : > { %v142_v8 = vld [vmem:[%s614_s18] sm:$0xff]  ;;  %v143_v9 = vld [vmem:[%s614_s18 + $0x8] sm:$0x1f]  ;;  %v145_v21 = vld [vmem:[%s614_s18 + $0x18] sm:$0x1f]  ;;  %v160_v23 = vmax.f32 %v144_v16, %v152_v17  ;;  %s531_s19 = smov 126  }
  0x2a   : > { %v150_v10 = vld [vmem:[%s614_s18 + $0x1] sm:$0xff]  ;;  %v178_v11 = vmax.f32 %v162_v4, %v170_v5  ;;  %v151_v12 = vld [vmem:[%s614_s18 + $0x9] sm:$0x1f]  ;;  %v179_v15 = vmax.f32 %v163_v7, %v171_v6  ;;  %v153_v22 = vld [vmem:[%s614_s18 + $0x19] sm:$0x1f]  ;;  %vm247_vm5 = vcmask 4096  }
  0x2b   : > { %v158_v13 = vmax.f32 %v142_v8, %v150_v10  ;;  %v166_v14 = vld [vmem:[%s614_s18 + $0x2] sm:$0xff]  ;;  %v159_v18 = vmax.f32 %v143_v9, %v151_v12  ;;  %v167_v19 = vld [vmem:[%s614_s18 + $0xa] sm:$0x1f]  ;;  %v168_v24 = vld [vmem:[%s614_s18 + $0x12] sm:$0xff]  ;;  %v161_v28 = vmax.f32 %v145_v21, %v153_v22  ;;  %s532_s20 = smov 124   ;;  %s533_s21 = smov 122  }
  0x2c   : > { %185 = vst.msk [vmem:[#allocation2 + $0x10] sm:$0x1] %vm182_vm0, %v178_v11  ;;  %v148_v26 = vld [vmem:[%s614_s18 + $0x30] sm:$0xff]  ;;  %v169_v29 = vld [vmem:[%s614_s18 + $0x1a] sm:$0x1f]  ;;  %v176_v30 = vmax.f32 %v160_v23, %v168_v24  ;;  %s534_s22 = smov 120  }
  0x2d   : > { %190 = vst.msk [vmem:[#allocation2 + $0xe] sm:$0x8] %vm187_vm1, %v178_v11  ;;  %v174_v20 = vmax.f32 %v158_v13, %v166_v14  ;;  %v175_v25 = vmax.f32 %v159_v18, %v167_v19  ;;  %v156_v27 = vld [vmem:[%s614_s18 + $0x31] sm:$0xff]  ;;  %v157_v32 = vld [vmem:[%s614_s18 + $0x39] sm:$0x1f]  ;;  %v177_v35 = vmax.f32 %v161_v28, %v169_v29  ;;  %vm268_vm6 = vcmask 12296  }
  0x2e   : > { %195 = vst.msk [vmem:[#allocation2 + $0xc] sm:$0x40] %vm192_vm2, %v178_v11  ;;  %v149_v31 = vld [vmem:[%s614_s18 + $0x38] sm:$0x1f]  ;;  %v164_v33 = vmax.f32 %v148_v26, %v156_v27  ;;  %vm285_vm7 = vcmask 20496   ;;  %s410_s23 = sshll.u32 %s400_s10, 2 }
  0x2f   : > { %200 = vst.msk [vmem:[#allocation2 + $0x12] sm:$0x2] %vm197_vm3, %v179_v15  ;;  %v172_v34 = vld [vmem:[%s614_s18 + $0x32] sm:$0xff]  ;;  %v165_v36 = vmax.f32 %v149_v31, %v157_v32  ;;  %v173_v38 = vld [vmem:[%s614_s18 + $0x3a] sm:$0x1f]  ;;  %p137_p6 = scmp.lt.s32.totalorder %s410_s23, 7 }
  0x30   : > { %205 = vst.msk [vmem:[#allocation2 + $0x10] sm:$0x10] %vm202_vm4, %v179_v15  ;;  %v180_v39 = vmax.f32 %v164_v33, %v172_v34  ;;  %vm302_vm8 = vcmask 28696   ;;  %vm319_vm9 = vcmask 36896   ;;  %vm328_vm10 = vcmask 36864  }
  0x31   : > { %183 = vst.msk [vmem:[#allocation2] sm:$0x1] %vm182_vm0, %v174_v20  ;;  %v181_v40 = vmax.f32 %v165_v36, %v173_v38  ;;  %s724_s23 = smov (!%p137_p6, %s410_s23), 7 }
  0x32   : > { %188 = vst.msk [vmem:[#allocation2 - $0x2] sm:$0x8] %vm187_vm1, %v174_v20  ;;  %s411_s24 = sshll.u32 %s724_s23, 3 }
  0x33   : > { %193 = vst.msk [vmem:[#allocation2 - $0x4] sm:$0x40] %vm192_vm2, %v174_v20  ;;  %s140_s27 = scalar_lea.vmem %s715_s1, %s411_s24 }
  0x34   : > { %198 = vst.msk [vmem:[#allocation2 + $0x2] sm:$0x2] %vm197_vm3, %v175_v25 }
  0x35   : > { %203 = vst.msk [vmem:[#allocation2] sm:$0x10] %vm202_vm4, %v175_v25 }
  0x36   : > { %184 = vst.msk [vmem:[#allocation2 + $0x8] sm:$0x1] %vm182_vm0, %v176_v30 }
  0x37   : > { %v209_v37 = vld [vmem:[#allocation2 + $0x10] sm:$0x1f]  ;;  %189 = vst.msk [vmem:[#allocation2 + $0x6] sm:$0x8] %vm187_vm1, %v176_v30 }
  0x38   : > { %219 = vrot.lane.b32.xlu1 %v209_v37, %s530_s16  ;;  %194 = vst.msk [vmem:[#allocation2 + $0x4] sm:$0x40] %vm192_vm2, %v176_v30 }
  0x39   : > { %199 = vst.msk [vmem:[#allocation2 + $0xa] sm:$0x2] %vm197_vm3, %v177_v35 }
  0x3a   : > { %204 = vst.msk [vmem:[#allocation2 + $0x8] sm:$0x10] %vm202_vm4, %v177_v35 }
  0x3b   : > { %186 = vst.msk [vmem:[#allocation2 + $0x18] sm:$0x1] %vm182_vm0, %v180_v39 }
  0x3c   : > { %v207_v41 = vld [vmem:[#allocation2] sm:$0x1f]  ;;  %191 = vst.msk [vmem:[#allocation2 + $0x16] sm:$0x8] %vm187_vm1, %v180_v39 }
  0x3d   : > { %215 = vrot.lane.b32.xlu0 %v207_v41, %s530_s16  ;;  %196 = vst.msk [vmem:[#allocation2 + $0x14] sm:$0x40] %vm192_vm2, %v180_v39 }
  0x3e   : > { %201 = vst.msk [vmem:[#allocation2 + $0x1a] sm:$0x2] %vm197_vm3, %v181_v40 }
  0x3f   : > { %206 = vst.msk [vmem:[#allocation2 + $0x18] sm:$0x10] %vm202_vm4, %v181_v40 }
  0x40   : > { %231 = vrot.lane.b32.xlu1 %v207_v41, %s531_s19 }
  0x41   : > { %v208_v42 = vld [vmem:[#allocation2 + $0x8] sm:$0x1f] }
  0x45   : > { %217 = vrot.lane.b32.xlu0 %v208_v42, %s530_s16 }
  0x46   : > { %v210_v43 = vld [vmem:[#allocation2 + $0x18] sm:$0x1f] }
  0x47   : > { %221 = vrot.lane.b32.xlu2 %v210_v43, %s530_s16 }
  0x48   : > { %237 = vrot.lane.b32.xlu1 %v210_v43, %s531_s19 }
  0x4d   : > { %235 = vrot.lane.b32.xlu0 %v209_v37, %s531_s19 }
  0x4f   : > { %233 = vrot.lane.b32.xlu2 %v208_v42, %s531_s19 }
  0xa1   : > { %v222_v45 = vpop.permute.xlu2 %221 }
  0xa2   : > { %v230_v53 = vmax.f32 %v210_v43, %v222_v45 }
  0xa9   : > { %v234_v51 = vpop.permute.xlu2 %233 }
  0xaa   : > { %v220_v44 = vpop.permute.xlu1 %219 }
  0xab   : > { %v229_v57 = vmax.f32 %v209_v37, %v220_v44 }
  0xaf   : > { %v216_v46 = vpop.permute.xlu0 %215 }
  0xb0   : > { %v227_v47 = vmax.f32 %v207_v41, %v216_v46 }
  0xb2   : > { %v232_v48 = vpop.permute.xlu1 %231 }
  0xb3   : > { %v243_v49 = vmax.f32 %v227_v47, %v232_v48 }
  0xb5   : > { %273 = vrot.lane.b32.xlu1 %v243_v49, %s532_s20  ;;  %256 = vrot.lane.b32.xlu2 %v243_v49, %s531_s19  ;;  %248 = vst.msk [vmem:[#allocation3] sm:$0x1f] %vm247_vm5, %v243_v49 }
  0xb7   : > { %v218_v50 = vpop.permute.xlu0 %217 }
  0xb8   : > { %v228_v52 = vmax.f32 %v208_v42, %v218_v50 }
  0xba   : > { %v244_v54 = vmax.f32 %v228_v52, %v234_v51  ;;  %v238_v55 = vpop.permute.xlu1 %237 }
  0xbb   : > { %v246_v56 = vmax.f32 %v230_v53, %v238_v55 }
  0xbc   : > { %258 = vrot.lane.b32.xlu0 %v244_v54, %s531_s19  ;;  %249 = vst.msk [vmem:[#allocation3 + $0x8] sm:$0x1f] %vm247_vm5, %v244_v54 }
  0xbd   : > { %290 = vrot.lane.b32.xlu1 %v243_v49, %s533_s21  ;;  %251 = vst.msk [vmem:[#allocation3 + $0x18] sm:$0x1f] %vm247_vm5, %v246_v56 }
  0xbf   : > { %v236_v58 = vpop.permute.xlu0 %235 }
  0xc0   : > { %v245_v59 = vmax.f32 %v229_v57, %v236_v58 }
  0xc2   : > { %260 = vrot.lane.b32.xlu2 %v245_v59, %s531_s19  ;;  %250 = vst.msk [vmem:[#allocation3 + $0x10] sm:$0x1f] %vm247_vm5, %v245_v59 }
  0xc4   : > { %275 = vrot.lane.b32.xlu0 %v244_v54, %s532_s20 }
  0xc5   : > { %292 = vrot.lane.b32.xlu1 %v244_v54, %s533_s21 }
  0xca   : > { %262 = vrot.lane.b32.xlu2 %v246_v56, %s531_s19 }
  0xcc   : > { %277 = vrot.lane.b32.xlu0 %v245_v59, %s532_s20 }
  0xcd   : > { %294 = vrot.lane.b32.xlu1 %v245_v59, %s533_s21 }
  0xd2   : > { %307 = vrot.lane.b32.xlu2 %v243_v49, %s534_s22 }
  0xd4   : > { %279 = vrot.lane.b32.xlu0 %v246_v56, %s532_s20 }
  0xd5   : > { %311 = vrot.lane.b32.xlu1 %v245_v59, %s534_s22 }
  0xda   : > { %309 = vrot.lane.b32.xlu2 %v244_v54, %s534_s22 }
  0xdc   : > { %296 = vrot.lane.b32.xlu0 %v246_v56, %s533_s21 }
  0xe2   : > { %313 = vrot.lane.b32.xlu2 %v246_v56, %s534_s22 }
 0x10f   : > { %v257_v60 = vpop.permute.xlu2 %256 }
 0x110   : > { %269 = vst.msk [vmem:[#allocation3] sm:$0x1f] %vm268_vm6, %v257_v60 }
 0x11c   : > { %v261_v61 = vpop.permute.xlu2 %260 }
 0x11d   : > { %271 = vst.msk [vmem:[#allocation3 + $0x10] sm:$0x1f] %vm268_vm6, %v261_v61 }
 0x124   : > { %v263_v62 = vpop.permute.xlu2 %262 }
 0x125   : > { %272 = vst.msk [vmem:[#allocation3 + $0x18] sm:$0x1f] %vm268_vm6, %v263_v62 }
 0x127   : > { %v274_v63 = vpop.permute.xlu1 %273 }
 0x128   : > { %286 = vst.msk [vmem:[#allocation3] sm:$0x1f] %vm285_vm7, %v274_v63 }
 0x12c   : > { %v308_v1 = vpop.permute.xlu2 %307 }
 0x12e   : > { %v259_v0 = vpop.permute.xlu0 %258 }
 0x12f   : > { %270 = vst.msk [vmem:[#allocation3 + $0x8] sm:$0x1f] %vm268_vm6, %v259_v0  ;;  %v291_v2 = vpop.permute.xlu1 %290 }
 0x130   : > { %303 = vst.msk [vmem:[#allocation3] sm:$0x1f] %vm302_vm8, %v291_v2 }
 0x131   : > { %320 = vst.msk [vmem:[#allocation3] sm:$0x1f] %vm319_vm9, %v308_v1 }
 0x134   : > { %v310_v6 = vpop.permute.xlu2 %309 }
 0x136   : > { %v276_v3 = vpop.permute.xlu0 %275 }
 0x137   : > { %287 = vst.msk [vmem:[#allocation3 + $0x8] sm:$0x1f] %vm285_vm7, %v276_v3  ;;  %v293_v4 = vpop.permute.xlu1 %292 }
 0x138   : > { %v324_v5 = vld [vmem:[#allocation3] sm:$0x1f]  ;;  %304 = vst.msk [vmem:[#allocation3 + $0x8] sm:$0x1f] %vm302_vm8, %v293_v4 }
 0x139   : > { %329 = vst.msk [vmem:[%s140_s27] sm:$0x1f] %vm328_vm10, %v324_v5 }
 0x13a   : > { %321 = vst.msk [vmem:[#allocation3 + $0x8] sm:$0x1f] %vm319_vm9, %v310_v6 }
 0x13c   : > { %v314_v14 = vpop.permute.xlu2 %313 }
 0x13e   : > { %v278_v7 = vpop.permute.xlu0 %277 }
 0x13f   : > { %288 = vst.msk [vmem:[#allocation3 + $0x10] sm:$0x1f] %vm285_vm7, %v278_v7  ;;  %v295_v8 = vpop.permute.xlu1 %294 }
 0x140   : > { %305 = vst.msk [vmem:[#allocation3 + $0x10] sm:$0x1f] %vm302_vm8, %v295_v8 }
 0x141   : > { %v325_v9 = vld [vmem:[#allocation3 + $0x8] sm:$0x1f] }
 0x142   : > { %330 = vst.msk [vmem:[%s140_s27 + $0x8] sm:$0x1f] %vm328_vm10, %v325_v9 }
 0x146   : > { %v280_v10 = vpop.permute.xlu0 %279 }
 0x147   : > { %289 = vst.msk [vmem:[#allocation3 + $0x18] sm:$0x1f] %vm285_vm7, %v280_v10  ;;  %v312_v11 = vpop.permute.xlu1 %311 }
 0x148   : > { %322 = vst.msk [vmem:[#allocation3 + $0x10] sm:$0x1f] %vm319_vm9, %v312_v11 }
 0x14e   : > { %v297_v12 = vpop.permute.xlu0 %296 }
 0x14f   : > { %v326_v13 = vld [vmem:[#allocation3 + $0x10] sm:$0x1f]  ;;  %306 = vst.msk [vmem:[#allocation3 + $0x18] sm:$0x1f] %vm302_vm8, %v297_v12 }
 0x150   : > { %331 = vst.msk [vmem:[%s140_s27 + $0x10] sm:$0x1f] %vm328_vm10, %v326_v13 }
 0x151   : > { %323 = vst.msk [vmem:[#allocation3 + $0x18] sm:$0x1f] %vm319_vm9, %v314_v14 }
 0x158   : > { %v327_v15 = vld [vmem:[#allocation3 + $0x18] sm:$0x1f] }
 0x159   : > { %332 = vst.msk [vmem:[%s140_s27 + $0x18] sm:$0x1f] %vm328_vm10, %v327_v15 }
 0x15a PF: > { %p11_p7 = scmp.ge.s32.totalorder %s565_s11, 4   ;;  %s719_s6 = smov %s518_s7 }
 0x15b   : > { %s720_s7 = smov %s522_s8  ;;  %s721_s8 = smov %s575_s14 }
 0x15c   : > { %s722_s9 = smov %s565_s11  ;;  %13 = sbr.rel (!%p11_p7) target bundleno = 3 (0x3), region = 64 }
 0x161   :  { %355 = vsyncpa [#allocation5], 1 }
 0x162   :  { %357 = vsyncpa [#allocation5 + $0x1], 1 }

</bundles_post_ra>
